<compile_context>
chip_gen: v6e
topology: v6e:2x2x1
jax: 0.10.0
libtpu: 0.0.40
codegen_flags: <defaults>
</compile_context>

<pallas_src>
import jax
import jax.numpy as jnp
from jax.experimental import pallas as pl
from jax.experimental.pallas import tpu as pltpu


def _align8(n):
    return ((int(n) + 7) // 8) * 8


def _pack_param_slab(params, hid):
    """Pack all Linear params into one (rows, 2*hid) f32 slab, 8-row aligned."""
    cols = 2 * hid
    entries = [
        ("w_cat", params["w_cat"]),                              # (n_cat, H)
        ("b_cat", jnp.reshape(params["b_cat"], (1, -1))),        # (1, H)
        ("w_inter", params["w_inter"]),                          # (3H, 2H)
        ("b_inter", jnp.reshape(params["b_inter"], (1, -1))),    # (1, 2H)
        ("w_final", jnp.reshape(params["w_final"], (1, -1))),    # (1, 2H)
        ("b_final", jnp.reshape(params["b_final"], (1, 1))),     # (1, 1)
    ]
    offs, segs, row = {}, [], 0
    for name, mat in entries:
        mat = jnp.asarray(mat, jnp.float32)
        r, c = mat.shape
        rp = _align8(r)
        seg = jnp.zeros((rp, cols), jnp.float32).at[:r, :c].set(mat)
        offs[name] = row
        segs.append(seg)
        row += rp
    return jnp.concatenate(segs, axis=0), offs


def _make_kernel(s1, s2, hid, n_cat, offs, use_bf16_mxu):
    dot_dt = jnp.bfloat16 if use_bf16_mxu else jnp.float32

    def kernel(idx_ref, cat_ref, emb_ref, slab_ref, out_ref):
        n_tokens = emb_ref.shape[1]
        bblk = idx_ref.shape[0]

        def relu_mean_embed(idx, table, seq_len):
            # mean_s relu(table[idx[b,s]]) == (counts[b,:] @ relu(table)) / S
            # (ReLU commutes with the row gather).  Exact for in-range ids;
            # out-of-range ids contribute zero (PyTorch would raise).
            tok = jax.lax.broadcasted_iota(jnp.int32, (bblk, seq_len, n_tokens), 2)
            counts = jnp.sum((idx[:, :, None] == tok).astype(jnp.float32), axis=1)
            relu_tab = jnp.maximum(table, 0.0)
            pooled = jnp.dot(counts.astype(dot_dt), relu_tab.astype(dot_dt),
                             preferred_element_type=jnp.float32)
            return pooled * (1.0 / seq_len)                       # (Bblk, H)

        idx = idx_ref[...]                                        # (Bblk, S1+S2)
        title = relu_mean_embed(idx[:, :s1], emb_ref[0], s1)      # (Bblk, H)
        full = relu_mean_embed(idx[:, s1:s1 + s2], emb_ref[1], s2)

        # category_out: x_cat @ Wc + bc, ReLU.
        w_cat = slab_ref[offs["w_cat"]:offs["w_cat"] + n_cat, :hid]
        b_cat = slab_ref[offs["b_cat"]:offs["b_cat"] + 1, :hid]
        cat = jnp.maximum(
            jnp.dot(cat_ref[...].astype(dot_dt), w_cat.astype(dot_dt),
                    preferred_element_type=jnp.float32) + b_cat, 0.0)

        # inter_dense as three static row-slices of w_inter (no lane concat).
        r = offs["w_inter"]
        w_it = slab_ref[r:r + hid, :]
        w_if = slab_ref[r + hid:r + 2 * hid, :]
        w_ic = slab_ref[r + 2 * hid:r + 3 * hid, :]
        b_inter = slab_ref[offs["b_inter"]:offs["b_inter"] + 1, :]
        h = (jnp.dot(title.astype(dot_dt), w_it.astype(dot_dt),
                     preferred_element_type=jnp.float32)
             + jnp.dot(full.astype(dot_dt), w_if.astype(dot_dt),
                       preferred_element_type=jnp.float32)
             + jnp.dot(cat.astype(dot_dt), w_ic.astype(dot_dt),
                       preferred_element_type=jnp.float32)
             + b_inter)
        h = jnp.maximum(h, 0.0)                                   # (Bblk, 2H)

        # final_dense (out_features=1) on the VPU: broadcast-mul + lane reduce,
        # kept in f32 (v5e has no bf16 VPU datapath).
        w_final = slab_ref[offs["w_final"]:offs["w_final"] + 1, :]
        b_final = slab_ref[offs["b_final"]:offs["b_final"] + 1, 0:1]
        o = jnp.sum(h * w_final, axis=-1, keepdims=True) + b_final
        out_ref[...] = jnp.maximum(o, 0.0).astype(out_ref.dtype)  # (Bblk, 1)

    return kernel


def three_inputs_net(idx1, idx2, x_cat, params, *, use_bf16_mxu=False,
                     block_b=None):
    B, S1 = idx1.shape
    _, S2 = idx2.shape
    n_tokens, H = params["emb1"].shape
    n_cat = x_cat.shape[1]

    # --- wrapper-side packing: 4 input DMAs instead of 11 ---
    idx_packed = jnp.concatenate(
        [idx1.astype(jnp.int32), idx2.astype(jnp.int32)], axis=1)    # (B, S1+S2)
    emb_packed = jnp.stack(
        [params["emb1"], params["emb2"]], axis=0).astype(jnp.float32)  # (2,T,H)
    slab, offs = _pack_param_slab(params, H)
    x_cat = x_cat.astype(jnp.float32)

    # --- batch grid (parallel -> both TCs on v7x; trivially (1,) at tiny B) ---
    if block_b is None:
        block_b = B if B <= 256 else 256
    if block_b != B and (B % block_b != 0 or block_b % 8 != 0):
        block_b = B
    grid = (B // block_b,)

    kernel = _make_kernel(S1, S2, H, n_cat, offs, use_bf16_mxu)

    # --- explicit VMEM budget (v7x: 64 MiB physical / 32 MiB scoped default) ---
    nbytes = lambda a: int(a.size) * a.dtype.itemsize
    block_bytes = (block_b * (S1 + S2) * 4 + block_b * n_cat * 4
                   + nbytes(emb_packed) + nbytes(slab) + block_b * 4)
    vmem_limit = int(min(max(4 * block_bytes + (4 << 20), 16 << 20), 48 << 20))

    return pl.pallas_call(
        kernel,
        out_shape=jax.ShapeDtypeStruct((B, 1), jnp.float32),
        grid=grid,
        in_specs=[
            pl.BlockSpec((block_b, S1 + S2), lambda i: (i, 0)),
            pl.BlockSpec((block_b, n_cat), lambda i: (i, 0)),
            # Constant index_maps: tables/weights stay VMEM-resident across steps.
            pl.BlockSpec((2, n_tokens, H), lambda i: (0, 0, 0)),
            pl.BlockSpec(slab.shape, lambda i: (0, 0)),
        ],
        out_specs=pl.BlockSpec((block_b, 1), lambda i: (i, 0)),
        compiler_params=pltpu.CompilerParams(
            dimension_semantics=("parallel",),
            vmem_limit_bytes=vmem_limit),
    )(idx_packed, x_cat, emb_packed, slab)


def ref_forward(idx1, idx2, x_cat, p):
    """Pure-JAX reference matching the PyTorch forward (convs unused)."""
    title = jnp.maximum(p["emb1"][idx1], 0.0).mean(axis=1)
    full = jnp.maximum(p["emb2"][idx2], 0.0).mean(axis=1)
    cat = jnp.maximum(x_cat @ p["w_cat"] + p["b_cat"], 0.0)
    concat = jnp.concatenate([title, full, cat], axis=1)
    h = jnp.maximum(concat @ p["w_inter"] + p["b_inter"], 0.0)
    # w_final stored (1, 2H) == PyTorch native (out, in) layout.
    return jnp.maximum(h @ p["w_final"].T + p["b_final"], 0.0)


if __name__ == "__main__":
    # Small, module-consistent shapes.
    B = 2              # batch
    S1, S2 = 8, 12     # title / full sequence lengths
    N_TOKENS = 32
    HID = 32
    N_CAT = 16
    CONCAT = 3 * HID   # concat_number_of_features = hid + hid + hid

    key = jax.random.PRNGKey(0)
    ks = jax.random.split(key, 10)

    idx1 = jax.random.randint(ks[0], (B, S1), 0, N_TOKENS, dtype=jnp.int32)
    idx2 = jax.random.randint(ks[1], (B, S2), 0, N_TOKENS, dtype=jnp.int32)
    x_cat = jax.random.normal(ks[2], (B, N_CAT), dtype=jnp.float32)

    params = {
        "emb1": jax.random.normal(ks[3], (N_TOKENS, HID), jnp.float32) * 0.1,
        "emb2": jax.random.normal(ks[4], (N_TOKENS, HID), jnp.float32) * 0.1,
        # category_out / inter_dense weights stored (in, out); biases (1, out).
        "w_cat": jax.random.normal(ks[5], (N_CAT, HID), jnp.float32) * 0.1,
        "b_cat": jax.random.normal(ks[6], (1, HID), jnp.float32) * 0.1,
        "w_inter": jax.random.normal(ks[7], (CONCAT, 2 * HID), jnp.float32) * 0.1,
        "b_inter": jax.random.normal(ks[8], (1, 2 * HID), jnp.float32) * 0.1,
        # final_dense weight kept (out=1, in=2H) so the kernel's VPU reduce is
        # a plain broadcast along the lane axis.
        "w_final": jax.random.normal(ks[9], (1, 2 * HID), jnp.float32) * 0.1,
        "b_final": jnp.full((1, 1), 0.05, jnp.float32),
    }

    ref = ref_forward(idx1, idx2, x_cat, params)

    # Exact-f32 path.
    out = jax.block_until_ready(three_inputs_net(idx1, idx2, x_cat, params))
    assert out.shape == (B, 1)
    assert jnp.allclose(out, ref, atol=1e-5, rtol=1e-5), (out, ref)

    # bf16 MXU-operand path (v6e/v7x throughput; f32 accumulation) -> looser tol.
    out_bf = jax.block_until_ready(
        three_inputs_net(idx1, idx2, x_cat, params, use_bf16_mxu=True))
    assert jnp.allclose(out_bf, ref, atol=2e-2, rtol=2e-2), (out_bf, ref)

    print("KERNEL_OK")
</pallas_src>

<mosaic_0001>
module attributes {stable_mosaic.version = 11 : i64} {
  func.func @kernel(%arg0: i32, %arg1: memref<2x20xi32, #tpu.memory_space<vmem>>, %arg2: memref<2x16xf32, #tpu.memory_space<vmem>>, %arg3: memref<2x32x32xf32, #tpu.memory_space<vmem>>, %arg4: memref<144x64xf32, #tpu.memory_space<vmem>>, %arg5: memref<2x1xf32, #tpu.memory_space<vmem>>) attributes {dimension_semantics = [#tpu.dimension_semantics<parallel>], iteration_bounds = array<i64: 1>, scalar_prefetch = 0 : i64, scratch_operands = 0 : i64, tpu.core_type = #tpu.core_type<tc>, window_params = [{transform_indices = @transform_0, window_bounds = array<i64: 2, 20>}, {transform_indices = @transform_1, window_bounds = array<i64: 2, 16>}, {pipeline_mode = #tpu.pipeline_mode<synchronous>, transform_indices = @transform_2, window_bounds = array<i64: 2, 32, 32>}, {pipeline_mode = #tpu.pipeline_mode<synchronous>, transform_indices = @transform_3, window_bounds = array<i64: 144, 64>}, {transform_indices = @transform_4, window_bounds = array<i64: 2, 1>}]} {
    %c0 = arith.constant 0 : index
    %c0_0 = arith.constant 0 : index
    %0 = vector.load %arg1[%c0, %c0_0] : memref<2x20xi32, #tpu.memory_space<vmem>>, vector<2x20xi32>
    %1 = vector.extract_strided_slice %0 {offsets = [0, 0], sizes = [2, 8], strides = [1, 1]} : vector<2x20xi32> to vector<2x8xi32>
    %c0_1 = arith.constant 0 : index
    %c0_2 = arith.constant 0 : index
    %c0_3 = arith.constant 0 : index
    %2 = vector.load %arg3[%c0_1, %c0_2, %c0_3] : memref<2x32x32xf32, #tpu.memory_space<vmem>>, vector<1x32x32xf32>
    %3 = vector.shape_cast %2 : vector<1x32x32xf32> to vector<32x32xf32>
    %4 = tpu.iota {dimensions = array<i32: 2>} : vector<2x8x32xi32>
    %5 = vector.shape_cast %1 : vector<2x8xi32> to vector<2x8x1xi32>
    %6 = vector.broadcast %5 : vector<2x8x1xi32> to vector<2x8x32xi32>
    %7 = arith.cmpi eq, %6, %4 : vector<2x8x32xi32>
    %8 = arith.extui %7 : vector<2x8x32xi1> to vector<2x8x32xi32>
    %9 = arith.sitofp %8 : vector<2x8x32xi32> to vector<2x8x32xf32>
    %cst = arith.constant dense<0.000000e+00> : vector<2x32xf32>
    %10 = vector.multi_reduction <add>, %9, %cst [1] : vector<2x8x32xf32> to vector<2x32xf32>
    %cst_4 = arith.constant 0.000000e+00 : f32
    %11 = vector.broadcast %cst_4 : f32 to vector<32x32xf32>
    %12 = arith.maximumf %3, %11 : vector<32x32xf32>
    %cst_5 = arith.constant dense<0.000000e+00> : vector<2x32xf32>
    %13 = tpu.matmul %10, %12, %cst_5 {dimension_numbers = #tpu.dot_dimension_numbers<[1], [0], [0], [1], [0, 0, 1, 1], [], []>} : vector<2x32xf32>, vector<32x32xf32>, vector<2x32xf32> -> vector<2x32xf32>
    %cst_6 = arith.constant 1.250000e-01 : f32
    %14 = vector.broadcast %cst_6 : f32 to vector<2x32xf32>
    %15 = arith.mulf %13, %14 : vector<2x32xf32>
    %16 = vector.extract_strided_slice %0 {offsets = [0, 8], sizes = [2, 12], strides = [1, 1]} : vector<2x20xi32> to vector<2x12xi32>
    %c1 = arith.constant 1 : index
    %c0_7 = arith.constant 0 : index
    %c0_8 = arith.constant 0 : index
    %17 = vector.load %arg3[%c1, %c0_7, %c0_8] : memref<2x32x32xf32, #tpu.memory_space<vmem>>, vector<1x32x32xf32>
    %18 = vector.shape_cast %17 : vector<1x32x32xf32> to vector<32x32xf32>
    %19 = tpu.iota {dimensions = array<i32: 2>} : vector<2x12x32xi32>
    %20 = vector.shape_cast %16 : vector<2x12xi32> to vector<2x12x1xi32>
    %21 = vector.broadcast %20 : vector<2x12x1xi32> to vector<2x12x32xi32>
    %22 = arith.cmpi eq, %21, %19 : vector<2x12x32xi32>
    %23 = arith.extui %22 : vector<2x12x32xi1> to vector<2x12x32xi32>
    %24 = arith.sitofp %23 : vector<2x12x32xi32> to vector<2x12x32xf32>
    %cst_9 = arith.constant dense<0.000000e+00> : vector<2x32xf32>
    %25 = vector.multi_reduction <add>, %24, %cst_9 [1] : vector<2x12x32xf32> to vector<2x32xf32>
    %cst_10 = arith.constant 0.000000e+00 : f32
    %26 = vector.broadcast %cst_10 : f32 to vector<32x32xf32>
    %27 = arith.maximumf %18, %26 : vector<32x32xf32>
    %cst_11 = arith.constant dense<0.000000e+00> : vector<2x32xf32>
    %28 = tpu.matmul %25, %27, %cst_11 {dimension_numbers = #tpu.dot_dimension_numbers<[1], [0], [0], [1], [0, 0, 1, 1], [], []>} : vector<2x32xf32>, vector<32x32xf32>, vector<2x32xf32> -> vector<2x32xf32>
    %cst_12 = arith.constant 0.0833333358 : f32
    %29 = vector.broadcast %cst_12 : f32 to vector<2x32xf32>
    %30 = arith.mulf %28, %29 : vector<2x32xf32>
    %c0_13 = arith.constant 0 : index
    %c0_14 = arith.constant 0 : index
    %31 = vector.load %arg4[%c0_13, %c0_14] : memref<144x64xf32, #tpu.memory_space<vmem>>, vector<16x32xf32>
    %c16 = arith.constant 16 : index
    %c0_15 = arith.constant 0 : index
    %32 = vector.load %arg4[%c16, %c0_15] : memref<144x64xf32, #tpu.memory_space<vmem>>, vector<1x32xf32>
    %c0_16 = arith.constant 0 : index
    %c0_17 = arith.constant 0 : index
    %33 = vector.load %arg2[%c0_16, %c0_17] : memref<2x16xf32, #tpu.memory_space<vmem>>, vector<2x16xf32>
    %cst_18 = arith.constant dense<0.000000e+00> : vector<2x32xf32>
    %34 = tpu.matmul %33, %31, %cst_18 {dimension_numbers = #tpu.dot_dimension_numbers<[1], [0], [0], [1], [0, 0, 1, 1], [], []>} : vector<2x16xf32>, vector<16x32xf32>, vector<2x32xf32> -> vector<2x32xf32>
    %35 = vector.broadcast %32 : vector<1x32xf32> to vector<2x32xf32>
    %36 = arith.addf %34, %35 : vector<2x32xf32>
    %cst_19 = arith.constant 0.000000e+00 : f32
    %37 = vector.broadcast %cst_19 : f32 to vector<2x32xf32>
    %38 = arith.maximumf %36, %37 : vector<2x32xf32>
    %c24 = arith.constant 24 : index
    %c0_20 = arith.constant 0 : index
    %39 = vector.load %arg4[%c24, %c0_20] : memref<144x64xf32, #tpu.memory_space<vmem>>, vector<32x64xf32>
    %c56 = arith.constant 56 : index
    %c0_21 = arith.constant 0 : index
    %40 = vector.load %arg4[%c56, %c0_21] : memref<144x64xf32, #tpu.memory_space<vmem>>, vector<32x64xf32>
    %c88 = arith.constant 88 : index
    %c0_22 = arith.constant 0 : index
    %41 = vector.load %arg4[%c88, %c0_22] : memref<144x64xf32, #tpu.memory_space<vmem>>, vector<32x64xf32>
    %c120 = arith.constant 120 : index
    %c0_23 = arith.constant 0 : index
    %42 = vector.load %arg4[%c120, %c0_23] : memref<144x64xf32, #tpu.memory_space<vmem>>, vector<1x64xf32>
    %cst_24 = arith.constant dense<0.000000e+00> : vector<2x64xf32>
    %43 = tpu.matmul %15, %39, %cst_24 {dimension_numbers = #tpu.dot_dimension_numbers<[1], [0], [0], [1], [0, 0, 1, 1], [], []>} : vector<2x32xf32>, vector<32x64xf32>, vector<2x64xf32> -> vector<2x64xf32>
    %cst_25 = arith.constant dense<0.000000e+00> : vector<2x64xf32>
    %44 = tpu.matmul %30, %40, %cst_25 {dimension_numbers = #tpu.dot_dimension_numbers<[1], [0], [0], [1], [0, 0, 1, 1], [], []>} : vector<2x32xf32>, vector<32x64xf32>, vector<2x64xf32> -> vector<2x64xf32>
    %45 = arith.addf %43, %44 : vector<2x64xf32>
    %cst_26 = arith.constant dense<0.000000e+00> : vector<2x64xf32>
    %46 = tpu.matmul %38, %41, %cst_26 {dimension_numbers = #tpu.dot_dimension_numbers<[1], [0], [0], [1], [0, 0, 1, 1], [], []>} : vector<2x32xf32>, vector<32x64xf32>, vector<2x64xf32> -> vector<2x64xf32>
    %47 = arith.addf %45, %46 : vector<2x64xf32>
    %48 = vector.broadcast %42 : vector<1x64xf32> to vector<2x64xf32>
    %49 = arith.addf %47, %48 : vector<2x64xf32>
    %cst_27 = arith.constant 0.000000e+00 : f32
    %50 = vector.broadcast %cst_27 : f32 to vector<2x64xf32>
    %51 = arith.maximumf %49, %50 : vector<2x64xf32>
    %c128 = arith.constant 128 : index
    %c0_28 = arith.constant 0 : index
    %52 = vector.load %arg4[%c128, %c0_28] : memref<144x64xf32, #tpu.memory_space<vmem>>, vector<1x64xf32>
    %c136 = arith.constant 136 : index
    %c0_29 = arith.constant 0 : index
    %53 = vector.load %arg4[%c136, %c0_29] : memref<144x64xf32, #tpu.memory_space<vmem>>, vector<1x1xf32>
    %54 = vector.broadcast %52 : vector<1x64xf32> to vector<2x64xf32>
    %55 = arith.mulf %51, %54 : vector<2x64xf32>
    %cst_30 = arith.constant dense<0.000000e+00> : vector<2xf32>
    %56 = vector.multi_reduction <add>, %55, %cst_30 [1] : vector<2x64xf32> to vector<2xf32>
    %57 = vector.shape_cast %56 : vector<2xf32> to vector<2x1xf32>
    %58 = vector.broadcast %53 : vector<1x1xf32> to vector<2x1xf32>
    %59 = arith.addf %57, %58 : vector<2x1xf32>
    %cst_31 = arith.constant 0.000000e+00 : f32
    %60 = vector.broadcast %cst_31 : f32 to vector<2x1xf32>
    %61 = arith.maximumf %59, %60 : vector<2x1xf32>
    %c0_32 = arith.constant 0 : index
    %c0_33 = arith.constant 0 : index
    %62 = vector.load %arg5[%c0_32, %c0_33] : memref<2x1xf32, #tpu.memory_space<vmem>>, vector<2x1xf32>
    tpu.vector_store %arg5[%c0_32, %c0_33], %61 {strides = array<i32>} : memref<2x1xf32, #tpu.memory_space<vmem>>, vector<2x1xf32>,
    return
  }
  func.func @transform_0(%arg0: i32) -> (i32, i32) {
    %c0_i32 = arith.constant 0 : i32
    %c0_i32_0 = arith.constant 0 : i32
    return %arg0, %c0_i32 : i32, i32
  }
  func.func @transform_1(%arg0: i32) -> (i32, i32) {
    %c0_i32 = arith.constant 0 : i32
    %c0_i32_0 = arith.constant 0 : i32
    return %arg0, %c0_i32 : i32, i32
  }
  func.func @transform_2(%arg0: i32) -> (i32, i32, i32) {
    %c0_i32 = arith.constant 0 : i32
    %c0_i32_0 = arith.constant 0 : i32
    %c0_i32_1 = arith.constant 0 : i32
    %c0_i32_2 = arith.constant 0 : i32
    return %c0_i32, %c0_i32_0, %c0_i32_1 : i32, i32, i32
  }
  func.func @transform_3(%arg0: i32) -> (i32, i32) {
    %c0_i32 = arith.constant 0 : i32
    %c0_i32_0 = arith.constant 0 : i32
    %c0_i32_1 = arith.constant 0 : i32
    return %c0_i32, %c0_i32_0 : i32, i32
  }
  func.func @transform_4(%arg0: i32) -> (i32, i32) {
    %c0_i32 = arith.constant 0 : i32
    %c0_i32_0 = arith.constant 0 : i32
    return %arg0, %c0_i32 : i32, i32
  }
}

</mosaic_0001>

<bundles_post_ra>
// kernel: tpu_custom_call.1
= control target key start
LH: loop header
LB: loop body
LE: loop exit
PB: predicated region body
PF: predicated region fallthrough
CT: control target
= control target key end

     0   :  { %v22_v0 = vlaneseq  ;;  %v729_v1 = vmov 0.0   ;;  %vm730_vm0 = vmmov 0   ;;  %vm44_vm3 = vcmask 261120   ;;  %s892_s0 = inlined_call_operand.vmem [shape: s32[2,20], index: 0, kind: input, shape index: {}]   ;;  %s893_s2 = inlined_call_operand.vmem [shape: f32[2,32,32], index: 2, kind: input, shape index: {}]   ;;  %s894_s3 = inlined_call_operand.vmem [shape: f32[144,64], index: 3, kind: input, shape index: {}]   ;;  %s895_s1 = inlined_call_operand.vmem [shape: f32[2,16], index: 1, kind: input, shape index: {}]   ;;  %s896_s4 = inlined_call_operand.vmem [shape: f32[2,1], index: 4, kind: output, shape index: {}]  }
   0x1   :  { %676 = vmatprep.subr.mxu1 %v729_v1  ;;  %665 = vmatprep.subr.mxu0 %v729_v1  ;;  %v17_v3 = vld [vmem:[%s892_s0] sm:$0x3]  ;;  %v623_v8 = vld [vmem:[%s893_s2 + $0x38] sm:$0xff]  ;;  %v622_v11 = vld [vmem:[%s893_s2 + $0x30] sm:$0xff]  ;;  %vm174_vm4 = vcmask 257024   ;;  %vm65_vm9 = vcmask 1041409  }
   0x2   :  { %v25_v2 = vshrl.u32 %v22_v0, 7  ;;  %v195_v9 = vmax.f32 %v623_v8, 0.0  ;;  %v21_v10 = vld [vmem:[%s893_s2 + $0x18] sm:$0xff]  ;;  %v194_v13 = vmax.f32 %v622_v11, 0.0  ;;  %v20_v14 = vld [vmem:[%s893_s2 + $0x10] sm:$0xff]  ;;  %v621_v15 = vld [vmem:[%s893_s2 + $0x28] sm:$0xff]  ;;  %684 = vmatprep.mubr.msk.f32.mxu1 %vm730_vm0, %v729_v1  ;;  %673 = vmatprep.mubr.msk.f32.mxu0 %vm730_vm0, %v729_v1 }
   0x3   :  { %v62_v12 = vmax.f32 %v21_v10, 0.0  ;;  %v61_v16 = vmax.f32 %v20_v14, 0.0  ;;  %v193_v17 = vmax.f32 %v621_v15, 0.0  ;;  %v19_v18 = vld [vmem:[%s893_s2 + $0x8] sm:$0xff]  ;;  %v620_v19 = vld [vmem:[%s893_s2 + $0x20] sm:$0xff]  ;;  %v23_v24 = vand.u32 127, %v22_v0 }
   0x4   :  { %v33_v4 = vsub.s32 1, %v25_v2  ;;  %v26_v5 = vsub.s32 0, %v25_v2  ;;  %677 = vmatpush3.msra.mxu1 %v195_v9  ;;  %v60_v20 = vmax.f32 %v19_v18, 0.0  ;;  %v192_v21 = vmax.f32 %v620_v19, 0.0  ;;  %v18_v22 = vld [vmem:[%s893_s2] sm:$0xff]  ;;  %v273_v8 = vld [vmem:[%s894_s3 + $0x8] sm:$0xff] }
   0x5   :  { %678 = vmatprep.subr.mxu1 %v729_v1  ;;  %666 = vmatpush3.msra.mxu0 %v62_v12  ;;  %v59_v23 = vmax.f32 %v18_v22, 0.0  ;;  %v361_v10 = vld [vmem:[%s894_s3 + $0x48] sm:$0xff]  ;;  %v272_v11 = vld [vmem:[%s894_s3] sm:$0xff]  ;;  %vm280_vm10 = vcmask 130048   ;;  %v355_v18 = vld [vmem:[%s894_s3 + $0x18] sm:$0xff]  ;;  %vm601_vm11 = vcmask 517120  }
   0x6   :  { %v34_v6 = vrot.slane %v17_v3, %v33_v4  ;;  %v27_v7 = vrot.slane %v17_v3, %v26_v5  ;;  %679 = vmatpush3.msra.mxu1 %v194_v13  ;;  %667 = vmatprep.subr.mxu0 %v729_v1  ;;  %v362_v4 = vld [vmem:[%s894_s3 + $0x50] sm:$0xff]  ;;  %v275_v12 = vld [vmem:[%s895_s1] sm:$0x3]  ;;  %v357_v15 = vld [vmem:[%s894_s3 + $0x28] sm:$0xff]  ;;  %vm611_vm12 = vcmask 1024  }
   0x7   :  { %680 = vmatprep.subr.mxu1 %v729_v1  ;;  %668 = vmatpush3.msra.mxu0 %v61_v16  ;;  %v358_v13 = vld [vmem:[%s894_s3 + $0x30] sm:$0xff]  ;;  %v360_v14 = vld [vmem:[%s894_s3 + $0x40] sm:$0xff]  ;;  %v359_v16 = vld [vmem:[%s894_s3 + $0x38] sm:$0xff] }
   0x8   :  { %155 = vbcast.lane.b32.xlu1 %v34_v6, 264  ;;  %147 = vbcast.lane.b32.xlu0 %v27_v7, 264 }
   0x9   :  { %681 = vmatpush3.msra.mxu1 %v193_v17  ;;  %669 = vmatprep.subr.mxu0 %v729_v1  ;;  %v356_v17 = vld [vmem:[%s894_s3 + $0x20] sm:$0xff] }
   0xa   :  { %682 = vmatprep.subr.mxu1 %v729_v1  ;;  %670 = vmatpush3.msra.mxu0 %v60_v20 }
   0xb   :  { %683 = vmatpush3.msra.mxu1 %v192_v21  ;;  %671 = vmatprep.subr.mxu0 %v729_v1  ;;  %v366_v21 = vld [vmem:[%s894_s3 + $0x70] sm:$0xff] }
   0xc   :  { %159 = vbcast.lane.b32.xlu1 %v34_v6, 272  ;;  %151 = vbcast.lane.b32.xlu0 %v27_v7, 272 }
   0xd   :  { %672 = vmatpush3.msra.mxu0 %v59_v23  ;;  %694 = vmatprep.subr.mxu1 %v729_v1 }
   0xe   :  { %687 = vmatprep.subr.mxu0 %v729_v1 }
  0x10   :  { %36 = vbcast.lane.b32.xlu1 %v34_v6, 256  ;;  %29 = vbcast.lane.b32.xlu0 %v27_v7, 256 }
  0x7a   :  { %v156_v25 = vpop.permute.xlu1 %155  ;;  %v148_v26 = vpop.permute.xlu0 %147 }
  0x7b   :  { %vm163_vm1 = vcmp.eq.s32.totalorder %v156_v25, %v23_v24  ;;  %vm161_vm2 = vcmp.eq.s32.totalorder %v148_v26, %v23_v24  ;;  %v365_v25 = vld [vmem:[%s894_s3 + $0x68] sm:$0xff] }
  0x7c   :  { %v626_v27 = vsel %vm163_vm1, 1.0, %v729_v1  ;;  %v624_v28 = vsel %vm161_vm2, 1.0, %v729_v1 }
  0x7d   :  { %v183_v33 = vsel %vm44_vm3, %v626_v27, 0.0  ;;  %v173_v34 = vsel %vm44_vm3, %v624_v28, 0.0  ;;  %v629_v27 = vld [vmem:[%s894_s3 + $0x10] ss:$0 sm:$0xff]  ;;  %v364_v28 = vld [vmem:[%s894_s3 + $0x60] sm:$0xff] }
  0x7e   :  { %v160_v29 = vpop.permute.xlu1 %159  ;;  %v152_v30 = vpop.permute.xlu0 %151 }
  0x7f   :  { %vm164_vm5 = vcmp.eq.s32.totalorder %v160_v29, %v23_v24  ;;  %vm162_vm6 = vcmp.eq.s32.totalorder %v152_v30, %v23_v24 }
  0x80   :  { %v627_v31 = vsel %vm164_vm5, 1.0, %v729_v1  ;;  %v625_v32 = vsel %vm162_vm6, 1.0, %v729_v1 }
  0x81   :  { %v184_v35 = vsel %vm174_vm4, %v627_v31, 0.0  ;;  %v175_v36 = vsel %vm174_vm4, %v625_v32, 0.0  ;;  %v363_v31 = vld [vmem:[%s894_s3 + $0x58] sm:$0xff] }
  0x82   :  { %v185_v37 = vadd.f32 %v184_v35, %v183_v33  ;;  %v176_v38 = vadd.f32 %v175_v36, %v173_v34  ;;  %v37_v39 = vpop.permute.xlu1 %36  ;;  %v30_v40 = vpop.permute.xlu0 %29 }
  0x83   :  { %vm39_vm7 = vcmp.eq.s32.totalorder %v37_v39, %v23_v24  ;;  %vm38_vm8 = vcmp.eq.s32.totalorder %v30_v40, %v23_v24  ;;  %v634_v39 = vld [vmem:[%s894_s3 + $0x78] ss:$0 sm:$0xff] }
  0x84   :  { %v186_v41 = vrot.slane %v185_v37, 4  ;;  %v177_v42 = vrot.slane %v176_v38, 4  ;;  %v618_v43 = vsel %vm39_vm7, 1.0, %v729_v1  ;;  %v617_v44 = vsel %vm38_vm8, 1.0, %v729_v1 }
  0x85   :  { %v52_v45 = vsel %vm44_vm3, %v618_v43, 0.0  ;;  %v45_v46 = vsel %vm44_vm3, %v617_v44, 0.0 }
  0x86   :  { %v187_v47 = vadd.f32 %v186_v41, %v185_v37  ;;  %v178_v48 = vadd.f32 %v177_v42, %v176_v38  ;;  %v53_v49 = vrot.slane %v52_v45, 4  ;;  %v46_v50 = vrot.slane %v45_v46, 4 }
  0x88   :  { %v188_v51 = vrot.slane %v187_v47, 2  ;;  %v179_v52 = vrot.slane %v178_v48, 2  ;;  %v54_v53 = vadd.f32 %v53_v49, %v52_v45  ;;  %v47_v54 = vadd.f32 %v46_v50, %v45_v46 }
  0x8a   :  { %v189_v55 = vadd.f32 %v188_v51, %v187_v47  ;;  %v180_v56 = vadd.f32 %v179_v52, %v178_v48  ;;  %v55_v57 = vrot.slane %v54_v53, 2  ;;  %v48_v58 = vrot.slane %v47_v54, 2  ;;  %v636_v47 = vld [vmem:[%s894_s3 + $0x88] ss:$0 sm:$0xff] }
  0x8c   :  { %v190_v59 = vrot.slane %v189_v55, 1  ;;  %v181_v60 = vrot.slane %v180_v56, 1  ;;  %v56_v61 = vadd.f32 %v55_v57, %v54_v53  ;;  %v49_v62 = vadd.f32 %v48_v58, %v47_v54 }
  0x8e   :  { %v57_v63 = vrot.slane %v56_v61, 1  ;;  %v50_v0 = vrot.slane %v49_v62, 1  ;;  %v182_v2 = vadd.f32 %v181_v60, %v180_v56  ;;  %v191_v3 = vadd.f32 %v190_v59, %v189_v55 }
  0x90   :  { %v58_v5 = vadd.f32 %v57_v63, %v56_v61  ;;  %v51_v6 = vadd.f32 %v50_v0, %v49_v62  ;;  %v198_v7 = vsel %vm65_vm9, %v191_v3, %v182_v2 }
  0x91   :  { %685 = vmatmul.mubr.msk.f32.vlgmr.msra.gmra.mxu1 %vm44_vm3, %v198_v7 }
  0x92   :  { %v66_v9 = vsel %vm65_vm9, %v58_v5, %v51_v6  ;;  %695 = vmatpush3.msra.mxu1 %v362_v4  ;;  %702 = vmatprep.mubr.msk.f32.mxu1 %vm730_vm0, %v729_v1 }
  0x93   :  { %674 = vmatmul.mubr.msk.f32.vlgmr.msra.gmra.mxu0 %vm44_vm3, %v66_v9  ;;  %696 = vmatprep.subr.mxu1 %v729_v1 }
  0x94   :  { %688 = vmatpush3.msra.mxu0 %v273_v8  ;;  %691 = vmatprep.mubr.msk.f32.mxu0 %vm730_vm0, %v729_v1 }
  0x95   :  { %689 = vmatprep.subr.mxu0 %v729_v1  ;;  %697 = vmatpush3.msra.mxu1 %v361_v10 }
  0x96   :  { %690 = vmatpush3.msra.mxu0 %v272_v11  ;;  %698 = vmatprep.subr.mxu1 %v729_v1 }
  0x97   :  { %692 = vmatmul.mubr.msk.f32.vlgmr.msra.gmra.mxu0 %vm280_vm10, %v275_v12  ;;  %705 = vmatprep.subr.mxu0 %v729_v1 }
  0x98   :  { %706 = vmatpush3.msra.mxu0 %v358_v13  ;;  %713 = vmatprep.mubr.msk.f32.mxu0 %vm730_vm0, %v729_v1 }
  0x99   :  { %707 = vmatprep.subr.mxu0 %v729_v1  ;;  %699 = vmatpush3.msra.mxu1 %v360_v14 }
  0x9a   :  { %708 = vmatpush3.msra.mxu0 %v357_v15  ;;  %700 = vmatprep.subr.mxu1 %v729_v1 }
  0x9b   :  { %709 = vmatprep.subr.mxu0 %v729_v1  ;;  %701 = vmatpush3.msra.mxu1 %v359_v16 }
  0x9c   :  { %710 = vmatpush3.msra.mxu0 %v356_v17  ;;  %716 = vmatprep.subr.mxu1 %v729_v1 }
  0x9d   :  { %711 = vmatprep.subr.mxu0 %v729_v1 }
  0x9e   :  { %712 = vmatpush3.msra.mxu0 %v355_v18 }
 0x151   :  { %v267_v19 = vpop.f32.mrf.mxu1 }
 0x152   :  { %v271_v20 = vmul.f32 0.083333336, %v267_v19 }
 0x153   :  { %v135_v22 = vpop.f32.mrf.mxu0  ;;  %v686_v23 = vpop.f32.mrf.mxu1 }
 0x154   :  { %v139_v24 = vmul.f32 0.125, %v135_v22  ;;  %703 = vmatmul.mubr.msk.f32.vlgmr.msra.gmra.mxu1 %vm44_vm3, %v271_v20 }
 0x155   :  { %v675_v26 = vpop.f32.mrf.mxu0  ;;  %717 = vmatpush3.msra.mxu1 %v366_v21  ;;  %724 = vmatprep.mubr.msk.f32.mxu1 %vm730_vm0, %v729_v1 }
 0x156   :  { %714 = vmatmul.mubr.msk.f32.vlgmr.msra.gmra.mxu0 %vm44_vm3, %v139_v24  ;;  %718 = vmatprep.subr.mxu1 %v729_v1 }
 0x157   :  { %v350_v29 = vpop.f32.mrf.mxu0  ;;  %719 = vmatpush3.msra.mxu1 %v365_v25 }
 0x158   :  { %v351_v30 = vadd.f32 %v629_v27, %v350_v29  ;;  %720 = vmatprep.subr.mxu1 %v729_v1 }
 0x159   :  { %v693_v32 = vpop.f32.mrf.mxu0  ;;  %721 = vmatpush3.msra.mxu1 %v364_v28 }
 0x15a   :  { %v354_v33 = vmax.f32 %v351_v30, 0.0  ;;  %722 = vmatprep.subr.mxu1 %v729_v1  ;;  %v635_v1 = vld [vmem:[%s894_s3 + $0x80] ss:$0 sm:$0xff] }
 0x15b   :  { %723 = vmatpush3.msra.mxu1 %v363_v31 }
 0x15c   :  { %725 = vmatmul.mubr.msk.f32.vlgmr.msra.gmra.mxu1 %vm44_vm3, %v354_v33 }
 0x214   :  { %v437_v34 = vpop.f32.mrf.mxu1 }
 0x216   :  { %v704_v35 = vpop.f32.mrf.mxu1  ;;  %v510_v36 = vpop.f32.mrf.mxu0 }
 0x217   :  { %v511_v38 = vadd.f32 %v510_v36, %v437_v34 }
 0x218   :  { %v715_v37 = vpop.f32.mrf.mxu0 }
 0x21c   :  { %v583_v40 = vpop.f32.mrf.mxu1 }
 0x21d   :  { %v587_v41 = vadd.f32 %v583_v40, %v511_v38 }
 0x21e   :  { %v726_v42 = vpop.f32.mrf.mxu1 }
 0x21f   :  { %v592_v43 = vadd.f32 %v634_v39, %v587_v41 }
 0x221   :  { %v593_v44 = vmax.f32 %v592_v43, 0.0 }
 0x223   :  { %v600_v45 = vmul.f32 %v635_v1, %v593_v44 }
 0x225   :  { %v602_v46 = vsel %vm601_vm11, %v600_v45, 0.0 }
 0x226   :  { %603 = vadd.xlane.f32.xlu0 %v602_v46 }
 0x2af   :  { %v604_v48 = vpop.xlane.xlu0 %603 }
 0x2b0   :  { %v609_v49 = vadd.f32 %v636_v47, %v604_v48 }
 0x2b2   :  { %v610_v50 = vmax.f32 %v609_v49, 0.0 }
 0x2b4   :  { %612 = vst.msk [vmem:[%s896_s4] sm:$0x3] %vm611_vm12, %v610_v50 }

</bundles_post_ra>
